<compile_context>
chip_gen: v7x
topology: tpu7x:2x2x1
jax: 0.10.0
libtpu: 0.0.40
codegen_flags: <defaults>
</compile_context>

<pallas_src>
import functools

import jax
import jax.numpy as jnp
from jax.experimental import pallas as pl
from jax.experimental.pallas import tpu as pltpu


def _round_up(x, m):
    return ((x + m - 1) // m) * m


def _conv_fusedk_kernel(*refs, B, KH, KW, Cin, Cout, Wp, M_pad, stride,
                        add_bias, apply_relu, emit_stats):
    # refs (bn=False): x_ref(B,Cin,L), w_ref(Cout,K), b_ref(Cout,1), o_ref(B,Cout,M_pad),
    #                  patch_ref(K,M_pad)
    # refs (bn=True):  ... + mask_ref(1,M_pad) input, sum_ref/ssq_ref(Cout,1) outputs.
    if emit_stats:
        x_ref, w_ref, b_ref, mask_ref, o_ref, sum_ref, ssq_ref, patch_ref = refs
        mask = mask_ref[...]                                   # (1, M_pad) f32
        step_sum = jnp.zeros((Cout, 1), jnp.float32)
        step_ssq = jnp.zeros((Cout, 1), jnp.float32)
    else:
        x_ref, w_ref, b_ref, o_ref, patch_ref = refs

    taps = [(kh, kw) for kh in range(KH) for kw in range(KW)]

    for b in range(B):
        # Fused im2col: KH*KW shifted row-flat slabs -> one (KH*KW*Cin, M_pad) operand
        # living in VMEM scratch.  The unaligned lane shifts are paid once here (load/
        # store slots, overlapped with the MXU), not once per matmul.
        for t, (kh, kw) in enumerate(taps):
            start = kh * Wp + kw
            if stride == 1:
                slab = x_ref[b, :, start:start + M_pad]        # (Cin, M_pad)
            else:
                # TODO(synk): stride>1 uses lane-strided loads and computes ~stride-x
                # wasted columns; a de-interleaved/compact-patch variant would be faster.
                slab = x_ref[b, :, pl.ds(start, M_pad, stride)]
            patch_ref[t * Cin:(t + 1) * Cin, :] = slab.astype(patch_ref.dtype)

        # Single MXU matmul with K = KH*KW*Cin, f32 accumulation.
        acc = jnp.dot(w_ref[...], patch_ref[...],
                      preferred_element_type=jnp.float32)      # (Cout, M_pad)
        if add_bias:
            acc = acc + b_ref[...]
        if apply_relu:
            acc = jnp.maximum(acc, 0.0)
        if emit_stats:
            step_sum = step_sum + jnp.sum(acc * mask, axis=-1, keepdims=True)
            step_ssq = step_ssq + jnp.sum(acc * acc * mask, axis=-1, keepdims=True)
        o_ref[b] = acc.astype(o_ref.dtype)

    if emit_stats:
        sum_ref[...] = step_sum
        ssq_ref[...] = step_ssq


def conv2d_forward(x_nchw, weight, bias, *, stride=1, same_padding=False,
                   relu=True, bn=False, bn_gamma=None, bn_beta=None,
                   compute_dtype=jnp.float32):
    """Forward pass of the PyTorch `Conv2d` wrapper module (conv [+BN] [+ReLU])."""
    N, Cin, H, W = x_nchw.shape
    Cout, Cin_w, KH, KW = weight.shape
    assert Cin_w == Cin
    pad = (KH - 1) // 2 if same_padding else 0
    OH = (H + 2 * pad - KH) // stride + 1
    OW = (W + 2 * pad - KW) // stride + 1
    Hp, Wp = H + 2 * pad, W + 2 * pad

    M_wide = OH * Wp                       # wide-grid outputs per image
    M_pad = _round_up(M_wide, 128)         # lane-dense output width (unmasked vst)
    Kdim = KH * KW * Cin

    # Few fat grid steps; keep 2 "parallel" steps so both v7x TCs get work
    # (on 1-TC v5e/v6e the grid is just a short sequential loop).
    num_steps = 2 if N >= 2 else 1
    B = -(-N // num_steps)
    N_pad = num_steps * B

    # ---- glue (O(input) bytes): pad + row-flatten image; reorder weights ----------
    xp = jnp.pad(x_nchw, ((0, N_pad - N), (0, 0), (pad, pad), (pad, pad)))
    xf = xp.reshape(N_pad, Cin, Hp * Wp)
    L_need = (KH - 1) * Wp + (KW - 1) + stride * (M_pad - 1) + 1
    L = _round_up(max(L_need, Hp * Wp), 128)
    if L > Hp * Wp:
        xf = jnp.pad(xf, ((0, 0), (0, 0), (0, L - Hp * Wp)))
    xf = xf.astype(compute_dtype)

    # Weight rows ordered (kh, kw, cin) to match the patch scratch rows.
    w2 = jnp.transpose(weight, (0, 2, 3, 1)).reshape(Cout, Kdim).astype(compute_dtype)
    b2 = bias.reshape(Cout, 1).astype(jnp.float32)

    out_dtype = jnp.float32 if bn else x_nchw.dtype
    add_bias = not bn                      # bias cancels under BN mean-subtraction
    apply_relu = bool(relu and not bn)

    kernel = functools.partial(
        _conv_fusedk_kernel, B=B, KH=KH, KW=KW, Cin=Cin, Cout=Cout, Wp=Wp,
        M_pad=M_pad, stride=stride, add_bias=add_bias, apply_relu=apply_relu,
        emit_stats=bn)

    in_specs = [
        pl.BlockSpec((B, Cin, L), lambda s: (s, 0, 0)),
        pl.BlockSpec((Cout, Kdim), lambda s: (0, 0)),
        pl.BlockSpec((Cout, 1), lambda s: (0, 0)),
    ]
    inputs = [xf, w2, b2]
    out_shapes = [jax.ShapeDtypeStruct((N_pad, Cout, M_pad), out_dtype)]
    out_specs = [pl.BlockSpec((B, Cout, M_pad), lambda s: (s, 0, 0))]
    if bn:
        cols = jnp.arange(M_pad)
        mask = ((cols < M_wide) & ((cols % Wp) < OW)).astype(jnp.float32)
        in_specs.append(pl.BlockSpec((1, M_pad), lambda s: (0, 0)))
        inputs.append(mask.reshape(1, M_pad))
        out_shapes += [jax.ShapeDtypeStruct((num_steps, Cout, 1), jnp.float32)] * 2
        out_specs += [pl.BlockSpec((None, Cout, 1), lambda s: (s, 0, 0))] * 2

    # VMEM budget: double-buffered input/output blocks + weights + patch scratch + acc.
    c_isz = jnp.dtype(compute_dtype).itemsize
    o_isz = jnp.dtype(out_dtype).itemsize
    est = (2 * B * Cin * L * c_isz
           + 2 * Cout * Kdim * c_isz
           + 2 * B * Cout * M_pad * o_isz
           + Kdim * M_pad * c_isz
           + Cout * M_pad * 4
           + (1 << 20))
    vmem_limit = int(min(max(2 * est, 32 << 20), 64 << 20))

    flops = 2 * N_pad * Kdim * Cout * M_pad
    bytes_accessed = int(xf.size * c_isz + w2.size * c_isz + b2.size * 4
                         + N_pad * Cout * M_pad * o_isz)

    results = pl.pallas_call(
        kernel,
        out_shape=tuple(out_shapes),
        grid_spec=pltpu.PrefetchScalarGridSpec(
            num_scalar_prefetch=0,
            grid=(num_steps,),
            in_specs=in_specs,
            out_specs=tuple(out_specs),
            scratch_shapes=[pltpu.VMEM((Kdim, M_pad), compute_dtype)],
        ),
        compiler_params=pltpu.CompilerParams(
            dimension_semantics=("parallel",),
            vmem_limit_bytes=vmem_limit),
        cost_estimate=pl.CostEstimate(flops=flops, transcendentals=0,
                                      bytes_accessed=bytes_accessed),
    )(*inputs)

    out_wide = results[0]
    # (N, Cout, OH*Wp) -> (N, Cout, OH, Wp) -> drop padded-width junk columns.
    # TODO(synk): for large feature maps, store compact OW-wide rows from the kernel
    # (or keep consumers in the wide layout) to avoid this extra HBM pass.
    out = out_wide[:N, :, :M_wide].reshape(N, Cout, OH, Wp)[:, :, :, :OW]

    if bn:
        out_sum, out_ssq = results[1], results[2]
        cnt = float(N * OH * OW)
        mean = (jnp.sum(out_sum, axis=0) / cnt).reshape(1, Cout, 1, 1)
        ex2 = (jnp.sum(out_ssq, axis=0) / cnt).reshape(1, Cout, 1, 1)
        var = jnp.maximum(ex2 - mean * mean, 0.0)
        gamma = jnp.ones((Cout,), jnp.float32) if bn_gamma is None else bn_gamma
        beta = jnp.zeros((Cout,), jnp.float32) if bn_beta is None else bn_beta
        out = (gamma.reshape(1, Cout, 1, 1) * (out - mean)
               * jax.lax.rsqrt(var + 1e-3) + beta.reshape(1, Cout, 1, 1))
        if relu:
            out = jnp.maximum(out, 0.0)

    return out.astype(x_nchw.dtype)


def _reference_conv2d(x, weight, bias, *, stride, pad, relu):
    ref = jax.lax.conv_general_dilated(
        x, weight, window_strides=(stride, stride),
        padding=[(pad, pad), (pad, pad)],
        dimension_numbers=("NCHW", "OIHW", "NCHW"))
    ref = ref + bias[None, :, None, None]
    if relu:
        ref = jnp.maximum(ref, 0.0)
    return ref


if __name__ == "__main__":
    # Module config: Conv2d(in_channels=4, out_channels=8, kernel_size=3,
    #                       stride=1, relu=True, same_padding=True, bn=False)
    in_channels, out_channels, kernel_size, stride = 4, 8, 3, 1

    key = jax.random.PRNGKey(0)
    kx, kw, kb = jax.random.split(key, 3)

    # PyTorch-style default Conv2d init (uniform in +-1/sqrt(fan_in)).
    fan_in = in_channels * kernel_size * kernel_size
    bound = 1.0 / (fan_in ** 0.5)
    weight = jax.random.uniform(
        kw, (out_channels, in_channels, kernel_size, kernel_size),
        minval=-bound, maxval=bound, dtype=jnp.float32)
    bias = jax.random.uniform(
        kb, (out_channels,), minval=-bound, maxval=bound, dtype=jnp.float32)

    x = jax.random.normal(kx, (2, 4, 16, 16), dtype=jnp.float32)

    # ---- main config: same padding, ReLU, no BN (f32 operands) ---------------
    y = conv2d_forward(x, weight, bias, stride=stride,
                       same_padding=True, relu=True, bn=False)
    y = jax.block_until_ready(y)
    y_ref = _reference_conv2d(x, weight, bias, stride=stride, pad=1, relu=True)
    assert y.shape == y_ref.shape, (y.shape, y_ref.shape)
    assert jnp.allclose(y, y_ref, atol=1e-4, rtol=1e-4), \
        float(jnp.max(jnp.abs(y - y_ref)))

    # ---- valid padding (pad=0), ReLU, no BN ----------------------------------
    y_v = conv2d_forward(x, weight, bias, stride=stride,
                         same_padding=False, relu=True, bn=False)
    y_v = jax.block_until_ready(y_v)
    y_v_ref = _reference_conv2d(x, weight, bias, stride=stride, pad=0, relu=True)
    assert jnp.allclose(y_v, y_v_ref, atol=1e-4, rtol=1e-4), \
        float(jnp.max(jnp.abs(y_v - y_v_ref)))

    # ---- bn=True path (training-mode batch stats, eps=1e-3, gamma=1, beta=0) -
    y_bn = conv2d_forward(x, weight, bias, stride=stride,
                          same_padding=True, relu=True, bn=True)
    y_bn = jax.block_until_ready(y_bn)
    conv_ref = _reference_conv2d(x, weight, bias, stride=stride, pad=1, relu=False)
    m = jnp.mean(conv_ref, axis=(0, 2, 3), keepdims=True)
    v = jnp.var(conv_ref, axis=(0, 2, 3), keepdims=True)
    bn_ref = jnp.maximum((conv_ref - m) / jnp.sqrt(v + 1e-3), 0.0)
    assert jnp.allclose(y_bn, bn_ref, atol=1e-4, rtol=1e-4), \
        float(jnp.max(jnp.abs(y_bn - bn_ref)))

    # ---- bf16-operand path (v6e/v7x MXU peak), f32 accumulation --------------
    y_bf = conv2d_forward(x, weight, bias, stride=stride,
                          same_padding=True, relu=True, bn=False,
                          compute_dtype=jnp.bfloat16)
    y_bf = jax.block_until_ready(y_bf)
    assert jnp.allclose(y_bf, y_ref, atol=5e-2, rtol=5e-2), \
        float(jnp.max(jnp.abs(y_bf - y_ref)))

    print("KERNEL_OK")
</pallas_src>

<mosaic_0001>
module attributes {stable_mosaic.version = 11 : i64} {
  func.func @_conv_fusedk_kernel(%arg0: i32, %arg1: memref<1x4x512xf32, #tpu.memory_space<vmem>>, %arg2: memref<8x36xf32, #tpu.memory_space<vmem>>, %arg3: memref<8x1xf32, #tpu.memory_space<vmem>>, %arg4: memref<1x8x384xf32, #tpu.memory_space<vmem>>, %arg5: memref<36x384xf32, #tpu.memory_space<vmem>>) attributes {dimension_semantics = [#tpu.dimension_semantics<parallel>], iteration_bounds = array<i64: 2>, scalar_prefetch = 0 : i64, scratch_operands = 1 : i64, tpu.core_type = #tpu.core_type<tc>, window_params = [{transform_indices = @transform_0, window_bounds = array<i64: 1, 4, 512>}, {pipeline_mode = #tpu.pipeline_mode<synchronous>, transform_indices = @transform_1, window_bounds = array<i64: 8, 36>}, {pipeline_mode = #tpu.pipeline_mode<synchronous>, transform_indices = @transform_2, window_bounds = array<i64: 8, 1>}, {transform_indices = @transform_3, window_bounds = array<i64: 1, 8, 384>}]} {
    %c0 = arith.constant 0 : index
    %c0_0 = arith.constant 0 : index
    %c0_1 = arith.constant 0 : index
    %0 = vector.load %arg1[%c0, %c0_0, %c0_1] : memref<1x4x512xf32, #tpu.memory_space<vmem>>, vector<1x4x384xf32>
    %1 = vector.shape_cast %0 : vector<1x4x384xf32> to vector<4x384xf32>
    %c0_2 = arith.constant 0 : index
    %c0_3 = arith.constant 0 : index
    %2 = vector.load %arg5[%c0_2, %c0_3] : memref<36x384xf32, #tpu.memory_space<vmem>>, vector<4x384xf32>
    tpu.vector_store %arg5[%c0_2, %c0_3], %1 {strides = array<i32>} : memref<36x384xf32, #tpu.memory_space<vmem>>, vector<4x384xf32>,
    %c0_4 = arith.constant 0 : index
    %c0_5 = arith.constant 0 : index
    %c1 = arith.constant 1 : index
    %3 = vector.load %arg1[%c0_4, %c0_5, %c1] : memref<1x4x512xf32, #tpu.memory_space<vmem>>, vector<1x4x384xf32>
    %4 = vector.shape_cast %3 : vector<1x4x384xf32> to vector<4x384xf32>
    %c4 = arith.constant 4 : index
    %c0_6 = arith.constant 0 : index
    %5 = vector.load %arg5[%c4, %c0_6] : memref<36x384xf32, #tpu.memory_space<vmem>>, vector<4x384xf32>
    tpu.vector_store %arg5[%c4, %c0_6], %4 {strides = array<i32>} : memref<36x384xf32, #tpu.memory_space<vmem>>, vector<4x384xf32>,
    %c0_7 = arith.constant 0 : index
    %c0_8 = arith.constant 0 : index
    %c2 = arith.constant 2 : index
    %6 = vector.load %arg1[%c0_7, %c0_8, %c2] : memref<1x4x512xf32, #tpu.memory_space<vmem>>, vector<1x4x384xf32>
    %7 = vector.shape_cast %6 : vector<1x4x384xf32> to vector<4x384xf32>
    %c8 = arith.constant 8 : index
    %c0_9 = arith.constant 0 : index
    %8 = vector.load %arg5[%c8, %c0_9] : memref<36x384xf32, #tpu.memory_space<vmem>>, vector<4x384xf32>
    tpu.vector_store %arg5[%c8, %c0_9], %7 {strides = array<i32>} : memref<36x384xf32, #tpu.memory_space<vmem>>, vector<4x384xf32>,
    %c0_10 = arith.constant 0 : index
    %c0_11 = arith.constant 0 : index
    %c18 = arith.constant 18 : index
    %9 = vector.load %arg1[%c0_10, %c0_11, %c18] : memref<1x4x512xf32, #tpu.memory_space<vmem>>, vector<1x4x384xf32>
    %10 = vector.shape_cast %9 : vector<1x4x384xf32> to vector<4x384xf32>
    %c12 = arith.constant 12 : index
    %c0_12 = arith.constant 0 : index
    %11 = vector.load %arg5[%c12, %c0_12] : memref<36x384xf32, #tpu.memory_space<vmem>>, vector<4x384xf32>
    tpu.vector_store %arg5[%c12, %c0_12], %10 {strides = array<i32>} : memref<36x384xf32, #tpu.memory_space<vmem>>, vector<4x384xf32>,
    %c0_13 = arith.constant 0 : index
    %c0_14 = arith.constant 0 : index
    %c19 = arith.constant 19 : index
    %12 = vector.load %arg1[%c0_13, %c0_14, %c19] : memref<1x4x512xf32, #tpu.memory_space<vmem>>, vector<1x4x384xf32>
    %13 = vector.shape_cast %12 : vector<1x4x384xf32> to vector<4x384xf32>
    %c16 = arith.constant 16 : index
    %c0_15 = arith.constant 0 : index
    %14 = vector.load %arg5[%c16, %c0_15] : memref<36x384xf32, #tpu.memory_space<vmem>>, vector<4x384xf32>
    tpu.vector_store %arg5[%c16, %c0_15], %13 {strides = array<i32>} : memref<36x384xf32, #tpu.memory_space<vmem>>, vector<4x384xf32>,
    %c0_16 = arith.constant 0 : index
    %c0_17 = arith.constant 0 : index
    %c20 = arith.constant 20 : index
    %15 = vector.load %arg1[%c0_16, %c0_17, %c20] : memref<1x4x512xf32, #tpu.memory_space<vmem>>, vector<1x4x384xf32>
    %16 = vector.shape_cast %15 : vector<1x4x384xf32> to vector<4x384xf32>
    %c20_18 = arith.constant 20 : index
    %c0_19 = arith.constant 0 : index
    %17 = vector.load %arg5[%c20_18, %c0_19] : memref<36x384xf32, #tpu.memory_space<vmem>>, vector<4x384xf32>
    tpu.vector_store %arg5[%c20_18, %c0_19], %16 {strides = array<i32>} : memref<36x384xf32, #tpu.memory_space<vmem>>, vector<4x384xf32>,
    %c0_20 = arith.constant 0 : index
    %c0_21 = arith.constant 0 : index
    %c36 = arith.constant 36 : index
    %18 = vector.load %arg1[%c0_20, %c0_21, %c36] : memref<1x4x512xf32, #tpu.memory_space<vmem>>, vector<1x4x384xf32>
    %19 = vector.shape_cast %18 : vector<1x4x384xf32> to vector<4x384xf32>
    %c24 = arith.constant 24 : index
    %c0_22 = arith.constant 0 : index
    %20 = vector.load %arg5[%c24, %c0_22] : memref<36x384xf32, #tpu.memory_space<vmem>>, vector<4x384xf32>
    tpu.vector_store %arg5[%c24, %c0_22], %19 {strides = array<i32>} : memref<36x384xf32, #tpu.memory_space<vmem>>, vector<4x384xf32>,
    %c0_23 = arith.constant 0 : index
    %c0_24 = arith.constant 0 : index
    %c37 = arith.constant 37 : index
    %21 = vector.load %arg1[%c0_23, %c0_24, %c37] : memref<1x4x512xf32, #tpu.memory_space<vmem>>, vector<1x4x384xf32>
    %22 = vector.shape_cast %21 : vector<1x4x384xf32> to vector<4x384xf32>
    %c28 = arith.constant 28 : index
    %c0_25 = arith.constant 0 : index
    %23 = vector.load %arg5[%c28, %c0_25] : memref<36x384xf32, #tpu.memory_space<vmem>>, vector<4x384xf32>
    tpu.vector_store %arg5[%c28, %c0_25], %22 {strides = array<i32>} : memref<36x384xf32, #tpu.memory_space<vmem>>, vector<4x384xf32>,
    %c0_26 = arith.constant 0 : index
    %c0_27 = arith.constant 0 : index
    %c38 = arith.constant 38 : index
    %24 = vector.load %arg1[%c0_26, %c0_27, %c38] : memref<1x4x512xf32, #tpu.memory_space<vmem>>, vector<1x4x384xf32>
    %25 = vector.shape_cast %24 : vector<1x4x384xf32> to vector<4x384xf32>
    %c32 = arith.constant 32 : index
    %c0_28 = arith.constant 0 : index
    %26 = vector.load %arg5[%c32, %c0_28] : memref<36x384xf32, #tpu.memory_space<vmem>>, vector<4x384xf32>
    tpu.vector_store %arg5[%c32, %c0_28], %25 {strides = array<i32>} : memref<36x384xf32, #tpu.memory_space<vmem>>, vector<4x384xf32>,
    %c0_29 = arith.constant 0 : index
    %c0_30 = arith.constant 0 : index
    %27 = vector.load %arg2[%c0_29, %c0_30] : memref<8x36xf32, #tpu.memory_space<vmem>>, vector<8x36xf32>
    %c0_31 = arith.constant 0 : index
    %c0_32 = arith.constant 0 : index
    %28 = vector.load %arg5[%c0_31, %c0_32] : memref<36x384xf32, #tpu.memory_space<vmem>>, vector<36x384xf32>
    %cst = arith.constant dense<0.000000e+00> : vector<8x384xf32>
    %29 = tpu.matmul %27, %28, %cst {dimension_numbers = #tpu.dot_dimension_numbers<[1], [0], [0], [1], [0, 0, 1, 1], [], []>} : vector<8x36xf32>, vector<36x384xf32>, vector<8x384xf32> -> vector<8x384xf32>
    %c0_33 = arith.constant 0 : index
    %c0_34 = arith.constant 0 : index
    %30 = vector.load %arg3[%c0_33, %c0_34] : memref<8x1xf32, #tpu.memory_space<vmem>>, vector<8x1xf32>
    %31 = vector.broadcast %30 : vector<8x1xf32> to vector<8x384xf32>
    %32 = arith.addf %29, %31 : vector<8x384xf32>
    %cst_35 = arith.constant 0.000000e+00 : f32
    %33 = vector.broadcast %cst_35 : f32 to vector<8x384xf32>
    %34 = arith.maximumf %32, %33 : vector<8x384xf32>
    %c0_36 = arith.constant 0 : index
    %c0_37 = arith.constant 0 : index
    %c0_38 = arith.constant 0 : index
    %35 = vector.load %arg4[%c0_36, %c0_37, %c0_38] : memref<1x8x384xf32, #tpu.memory_space<vmem>>, vector<1x8x384xf32>
    %36 = vector.shape_cast %35 : vector<1x8x384xf32> to vector<8x384xf32>
    %37 = vector.shape_cast %34 : vector<8x384xf32> to vector<1x8x384xf32>
    tpu.vector_store %arg4[%c0_36, %c0_37, %c0_38], %37 {strides = array<i32>} : memref<1x8x384xf32, #tpu.memory_space<vmem>>, vector<1x8x384xf32>,
    return
  }
  func.func @transform_0(%arg0: i32) -> (i32, i32, i32) {
    %c0_i32 = arith.constant 0 : i32
    %c0_i32_0 = arith.constant 0 : i32
    %c0_i32_1 = arith.constant 0 : i32
    return %arg0, %c0_i32, %c0_i32_0 : i32, i32, i32
  }
  func.func @transform_1(%arg0: i32) -> (i32, i32) {
    %c0_i32 = arith.constant 0 : i32
    %c0_i32_0 = arith.constant 0 : i32
    %c0_i32_1 = arith.constant 0 : i32
    return %c0_i32, %c0_i32_0 : i32, i32
  }
  func.func @transform_2(%arg0: i32) -> (i32, i32) {
    %c0_i32 = arith.constant 0 : i32
    %c0_i32_0 = arith.constant 0 : i32
    %c0_i32_1 = arith.constant 0 : i32
    return %c0_i32, %c0_i32_0 : i32, i32
  }
  func.func @transform_3(%arg0: i32) -> (i32, i32, i32) {
    %c0_i32 = arith.constant 0 : i32
    %c0_i32_0 = arith.constant 0 : i32
    %c0_i32_1 = arith.constant 0 : i32
    return %arg0, %c0_i32, %c0_i32_0 : i32, i32, i32
  }
}

</mosaic_0001>

<bundles_post_ra>
// kernel: tpu_custom_call.1
= control target key start
LH: loop header
LB: loop body
LE: loop exit
PB: predicated region body
PF: predicated region fallthrough
CT: control target
= control target key end

     0   :  { %8 = vsyncpa [#allocation4], 0  ;;  %s1093_s0 = inlined_call_operand.hbm [shape: f32[2,4,512], index: 0, kind: input, shape index: {}]   ;;  %s1094_s1 = inlined_call_operand.vmem [shape: f32[8,36], index: 1, kind: input, shape index: {}]   ;;  %s1095_s2 = inlined_call_operand.vmem [shape: f32[8,1], index: 2, kind: input, shape index: {}]   ;;  %s1096_s3 = inlined_call_operand.hbm [shape: f32[2,8,384], index: 3, kind: output, shape index: {}]  }
   0x1   :  { %10 = vsyncpa [#allocation4 + $0x1], 0 }
   0x2   :  { %11 = vsyncpa [#allocation5], 0 }
   0x3   :  { %13 = vsyncpa [#allocation5 + $0x1], 0  ;;  %s902_s12 = smov 0   ;;  %s904_s13 = smov 0  }
   0x4   :  { %s906_s14 = smov 0   ;;  %s908_s15 = smov 0  }
   0x5 LB: > { %s923_s16 = sadd.s32 4294967295, %s866_s15   ;;  %s655_s17 = sadd.s32 4294967294, %s866_s15   ;;  %s866_s15 = sphi %s908_s15, %s1111_s15   ;;  %s862_s14 = sphi %s906_s14, %s1110_s14   ;;  %s858_s13 = sphi %s904_s13, %s1109_s13   ;;  %s854_s12 = sphi %s902_s12, %s1108_s12  }
   0x6   : > { %s927_s18 = sadd.s32 1, %s866_s15   ;;  %s26_s19 = sadd.s32 1, %s862_s14 }
   0x7   : > { %s23_s20 = ssub.s32 %s866_s15, %s927_s18  ;;  %p33_p0 = scmp.ne.s32.totalorder %s862_s14, %s858_s13 }
   0x8   : > { %p24_p1 = scmp.eq.s32.totalorder %s23_s20, 0  ;;  %p34_p2 = scmp.eq.s32.totalorder %s866_s15, 0 }
   0x9   : > { %p39_p3 = scmp.ne.s32.totalorder %s858_s13, %s854_s12  ;;  %p40_p4 = scmp.eq.s32.totalorder %s923_s16, 0 }
   0xa   : > { %s939_s21 = scalar_select %p24_p1, %s862_s14, %s26_s19  }
   0xb   : > { %p941_p5 = por %p34_p2, %p33_p0  ;;  %p945_p6 = por %p40_p4, %p39_p3 }
   0xc   : > { %p105_p7 = scmp.eq.s32.totalorder %s923_s16, 1  ;;  %p111_p8 = scmp.eq.s32.totalorder %s655_s17, 1 }
   0xd   : > { %p719_p10 = scmp.lt.s32.totalorder %s866_s15, 2  ;;  %s137_s26 = sand.u32 1, %s862_s14  }
   0xe   : > { %p952_p11 = por %p105_p7, %p33_p0  ;;  %p956_p12 = por %p111_p8, %p39_p3 }
   0xf   : > { %s671_s27 = sshll.u32 %s866_s15, 8  ;;  %s658_s28 = sshll.u32 %s137_s26, 4 }
  0x10   : > { %s1100_s24 = scalar_select %p952_p11, 1, 0 }
  0x11   : > { %s1101_s25 = scalar_select %p956_p12, 1, 0 }
  0x12   : > { %s965_s4 = scalar_lea.hbm %s1093_s0, %s671_s27  ;;  %s141_s5 = scalar_lea.vmem [#allocation3], %s658_s28 }
  0x13   : > { %s149_s6 = sshll.u32 %s141_s5, 4  ;;  %p969_p13 = pnand %p719_p10, %p941_p5  ;;  %s973_s6 = int_to_ptr.vmem [resolvable:$true] %s149_s6 }
  0x14   : > { %s138_s8 = scalar_lea.sflag [#allocation4], %s137_s26  ;;  %s770_s9 = scalar_lea.hbm %s965_s4, 256 }
  0x15   : > { %p771_p2 = scmp.ne.s32.totalorder %s965_s4, %s770_s9  ;;  %p772_p3 = pneg %p969_p13 }
  0x16   : > { %s775_s17 = scalar_lea.hbm %s1093_s0, 512  ;;  %p776_p5 = scmp.lt.u32.totalorder %s965_s4, %s1093_s0 }
  0x17   : > { %p773_p4 = pnand %p772_p3, %p771_p2  ;;  %p777_p8 = scmp.lt.u32.totalorder %s775_s17, %s770_s9 }
  0x18   : > { %p779_p9 = scmp.lt.u32.totalorder %s770_s9, %s965_s4 }
  0x19   : > { %p774_p7 = pneg %p773_p4  ;;  %p778_p10 = por %p777_p8, %p776_p5 }
  0x1b   : > { %p780_p0 = por %p779_p9, %p778_p10 }
  0x1d   : > { %p781_p1 = pnand %p780_p0, %p774_p7 }
  0x1f   : > { %784 = shalt.err (!%p781_p1)
}
  0x20   : > { %s785_s22 = scalar_lea.vmem %s973_s6, 256  ;;  %s868_s26 = smov [#allocation3]  }
  0x21   : > { %p786_p2 = scmp.ne.s32.totalorder %s973_s6, %s785_s22  ;;  %s790_s27 = sshll.u32 %s868_s26, 4  ;;  %s791_s27 = int_to_ptr.vmem [resolvable:$false] %s790_s27 }
  0x22   : > { %s792_s28 = scalar_lea.vmem %s791_s27, 512  ;;  %p793_p11 = scmp.lt.s32.totalorder %s973_s6, %s791_s27 }
  0x23   : > { %p788_p4 = pnand %p786_p2, %p772_p3  ;;  %p794_p5 = scmp.lt.s32.totalorder %s792_s28, %s785_s22 }
  0x25   : > { %p789_p12 = pneg %p788_p4  ;;  %p795_p8 = por %p794_p5, %p793_p11 }
  0x27   : > { %p796_p9 = pnand %p795_p8, %p789_p12 }
  0x29   : > { %799 = shalt.err (!%p796_p9)
}
  0x2a   : > { %714 = dma.hbm_to_vmem [thread:$0]  (!%p969_p13), %s965_s4, 256, %s973_s6, %s138_s8  }
  0x2b   : > { %p1103_p0 = scmp.lt.s32.totalorder %s866_s15, 3  ;;  %p1104_p1 = scmp.ge.s32.totalorder %s866_s15, 1 }
  0x2d   : > { %p155_p3 = pnand %p1104_p1, %p1103_p0 }
  0x2e   : > { %s1007_s29 = sand.u32 (!%p155_p3), 1, %s858_s13  }
  0x2f   : > { %158 = sbr.rel (%p155_p3) target bundleno = 472 (0x1d8), region = 32  ;;  %s662_s30 = sshll.u32 (!%p155_p3), %s1007_s29, 4 }
  0x30   : > { %s161_s5 = scalar_lea.sflag (!%p155_p3), [#allocation4], %s1007_s29  ;;  %s164_s9 = scalar_lea.vmem (!%p155_p3), [#allocation3], %s662_s30 }
  0x36   : > { %845 = dma.done.wait (%p945_p6), %s161_s5, 256  }
  0x37   : > { %847 = vsyncadd (%p945_p6), %s161_s5, 4294967040  ;;  %v220_v0 = vld [vmem:[%s164_s9 + $0x8] sm:$0xff]  ;;  %v195_v1 = vld [vmem:[%s164_s9] sm:$0xff]  ;;  %s869_s4 = smov 126   ;;  %s870_s6 = smov 127   ;;  %v872_v7 = vmov 0.0|0.0  }
  0x38   : > { %229 = vrot.lane.b32.xlu1 %v220_v0, %s869_s4  ;;  %203 = vrot.lane.b32.xlu0 %v195_v1, %s870_s6  ;;  %v223_v2 = vcombine.high %v195_v1, %v195_v1  ;;  %192 = vst [vmem:[#allocation2] sm:$0xf] %v195_v1  ;;  %v188_v3 = vld [vmem:[%s164_s9 + $0x8] sm:$0xf]  ;;  %s871_s7 = smov 110   ;;  %v248_v4 = vcombine.low %v220_v0, %v220_v0  ;;  %s873_s23 = smov 109  }
  0x39   : > { %194 = vst [vmem:[#allocation2 + $0x10] sm:$0xf] %v188_v3  ;;  %v199_v5 = vcombine.low %v195_v1, %v195_v1  ;;  %v224_v6 = vcombine.high %v220_v0, %v220_v0  ;;  %699 = vmatprep.subr.bf16.mxu1 %v872_v7  ;;  %s874_s8 = smov 108   ;;  %s875_s10 = smov 92   ;;  %v877_v8 = vmov 0.0   ;;  %vm879_vm0 = vmmov 0  }
  0x3a   : > { %193 = vst [vmem:[#allocation2 + $0x8] sm:$0xf] %v223_v2  ;;  %s876_s11 = smov 91   ;;  %487 = vmatprep.mubr.f32.mxu0 %v877_v8  ;;  %s878_s17 = smov 90   ;;  %688 = vmatprep.mubr.msk.f32.mxu1 %vm879_vm0, %v877_v8  ;;  %v880_v9 = vmov 0   ;;  %v403_v10 = vld [vmem:[%s1095_s2] sm:$0xff] }
  0x3b   : > { %765 = vset.pattern.permute.xlu0 %v880_v9  ;;  %vm233_vm1 = vcmask 1031168   ;;  %vm257_vm2 = vcmask 900096   ;;  %vm209_vm3 = vcmask 1039360   ;;  %vm281_vm4 = vcmask 891904   ;;  %s705_s27 = smul.u32 24, %s1007_s29  ;;  %p1105_p11 = scmp.ne.s32.totalorder %s1100_s24, 0 }
  0x3c   : > { %227 = vrot.lane.b32.xlu1 %v223_v2, %s869_s4  ;;  %251 = vrot.lane.b32.xlu0 %v195_v1, %s871_s7  ;;  %vm305_vm5 = vcmask 883712   ;;  %vm329_vm6 = vcmask 752640   ;;  %vm353_vm7 = vcmask 744448   ;;  %vm377_vm8 = vcmask 736256   ;;  %s706_s28 = smul.u32 384, %s923_s16  ;;  %s571_s16 = scalar_lea.sflag [#allocation5], %s1007_s29 }
  0x3d   : > { %vm413_vm9 = vcmask 1043456   ;;  %vm409_vm10 = vcmask 293888   ;;  %s186_s30 = scalar_lea.vmem [#allocation6], %s705_s27 }
  0x3e   : > { %s585_s5 = sshll.u32 %s186_s30, 4  ;;  %s1051_s5 = int_to_ptr.vmem [resolvable:$true] %s585_s5 }
  0x40   : > { %253 = vrot.lane.b32.xlu1 %v248_v4, %s871_s7  ;;  %205 = vrot.lane.b32.xlu0 %v248_v4, %s870_s6 }
  0x44   : > { %225 = vrot.lane.b32.xlu1 %v195_v1, %s869_s4  ;;  %201 = vrot.lane.b32.xlu0 %v199_v5, %s870_s6 }
  0x48   : > { %207 = vrot.lane.b32.xlu1 %v220_v0, %s870_s6  ;;  %249 = vrot.lane.b32.xlu0 %v199_v5, %s871_s7  ;;  %s1049_s6 = scalar_lea.hbm %s1096_s3, %s706_s28 }
  0x4c   : > { %255 = vrot.lane.b32.xlu1 %v220_v0, %s871_s7  ;;  %231 = vrot.lane.b32.xlu0 %v224_v6, %s869_s4  ;;  %s800_s7 = scalar_lea.vmem %s1051_s5, 384 }
  0x4d   : > { %p801_p6 = scmp.ne.s32.totalorder %s1051_s5, %s800_s7 }
  0x4f   : > { %p802_p12 = pnand %p801_p6, %p1105_p11 }
  0x50   : > { %277 = vrot.lane.b32.xlu1 %v220_v0, %s873_s23  ;;  %275 = vrot.lane.b32.xlu0 %v223_v2, %s873_s23 }
  0x51   : > { %p803_p13 = pneg %p802_p12 }
  0x54   : > { %301 = vrot.lane.b32.xlu1 %v248_v4, %s874_s8  ;;  %299 = vrot.lane.b32.xlu0 %v195_v1, %s874_s8 }
  0x58   : > { %325 = vrot.lane.b32.xlu1 %v220_v0, %s875_s10  ;;  %323 = vrot.lane.b32.xlu0 %v223_v2, %s875_s10 }
  0x5c   : > { %349 = vrot.lane.b32.xlu1 %v248_v4, %s876_s11  ;;  %347 = vrot.lane.b32.xlu0 %v195_v1, %s876_s11 }
  0x60   : > { %297 = vrot.lane.b32.xlu1 %v199_v5, %s874_s8  ;;  %273 = vrot.lane.b32.xlu0 %v195_v1, %s873_s23 }
  0x64   : > { %345 = vrot.lane.b32.xlu1 %v199_v5, %s876_s11  ;;  %321 = vrot.lane.b32.xlu0 %v195_v1, %s875_s10 }
  0x68   : > { %303 = vrot.lane.b32.xlu1 %v220_v0, %s874_s8  ;;  %279 = vrot.lane.b32.xlu0 %v224_v6, %s873_s23  ;;  %s881_s23 = smov [#allocation6]  }
  0x69   : > { %s804_s8 = sshll.u32 %s881_s23, 4  ;;  %s805_s8 = int_to_ptr.vmem [resolvable:$false] %s804_s8 }
  0x6a   : > { %p807_p7 = scmp.lt.s32.totalorder %s1051_s5, %s805_s8 }
  0x6c   : > { %351 = vrot.lane.b32.xlu1 %v220_v0, %s876_s11  ;;  %327 = vrot.lane.b32.xlu0 %v224_v6, %s875_s10  ;;  %s806_s10 = scalar_lea.vmem %s805_s8, 768 }
  0x6d   : > { %p808_p10 = scmp.lt.s32.totalorder %s806_s10, %s800_s7 }
  0x6f   : > { %p809_p2 = por %p808_p10, %p807_p7 }
  0x70   : > { %373 = vrot.lane.b32.xlu1 %v220_v0, %s878_s17  ;;  %371 = vrot.lane.b32.xlu0 %v223_v2, %s878_s17 }
  0x71   : > { %p810_p4 = pnand %p809_p2, %p803_p13 }
  0x74   : > { %375 = vrot.lane.b32.xlu1 %v224_v6, %s878_s17  ;;  %369 = vrot.lane.b32.xlu0 %v195_v1, %s878_s17 }
  0x78   : > { %406 = vperm.xlu0 %765, %v403_v10  }
  0xaa   : > { %v230_v11 = vpop.permute.xlu1 %229  ;;  %v204_v12 = vpop.permute.xlu0 %203 }
  0xae   : > { %v228_v13 = vpop.permute.xlu1 %227  ;;  %v252_v14 = vpop.permute.xlu0 %251 }
  0xaf   : > { %v235_v15 = vsel %vm233_vm1, %v228_v13, %v230_v11 }
  0xb0   : > { %241 = vst [vmem:[#allocation2 + $0x20] sm:$0xf] %v235_v15 }
  0xb2   : > { %v254_v16 = vpop.permute.xlu1 %253  ;;  %v206_v17 = vpop.permute.xlu0 %205 }
  0xb3   : > { %v259_v18 = vsel %vm257_vm2, %v252_v14, %v254_v16  ;;  %v211_v19 = vsel %vm209_vm3, %v204_v12, %v206_v17 }
  0xb4   : > { %265 = vst [vmem:[#allocation2 + $0x20] sm:$0xf0] %v259_v18  ;;  %217 = vst [vmem:[#allocation2 + $0x8] sm:$0xf0] %v211_v19 }
  0xb6   : > { %v226_v20 = vpop.permute.xlu1 %225  ;;  %v202_v21 = vpop.permute.xlu0 %201 }
  0xb7   : > { %v234_v22 = vsel %vm233_vm1, %v226_v20, %v228_v13  ;;  %v210_v23 = vsel %vm209_vm3, %v202_v21, %v204_v12 }
  0xb8   : > { %240 = vst [vmem:[#allocation2 + $0x18] sm:$0xf] %v234_v22  ;;  %216 = vst [vmem:[#allocation2] sm:$0xf0] %v210_v23  ;;  %v387_v23 = vld [vmem:[%s1094_s1] sm:$0xff] }
  0xba   : > { %v208_v24 = vpop.permute.xlu1 %207  ;;  %v250_v25 = vpop.permute.xlu0 %249 }
  0xbb   : > { %v212_v26 = vsel %vm209_vm3, %v206_v17, %v208_v24  ;;  %v258_v27 = vsel %vm257_vm2, %v250_v25, %v252_v14  ;;  %v389_v28 = vld [vmem:[#allocation2 + $0x8] sm:$0xff]  ;;  %v392_v29 = vld [vmem:[#allocation2 + $0x20] sm:$0xff] }
  0xbc   : > { %218 = vst [vmem:[#allocation2 + $0x10] sm:$0xf0] %v212_v26  ;;  %264 = vst [vmem:[#allocation2 + $0x18] sm:$0xf0] %v258_v27  ;;  %v691_v30 = vpack.c.bf16 %v392_v29, %v389_v28 }
  0xbe   : > { %v256_v31 = vpop.permute.xlu1 %255  ;;  %v232_v32 = vpop.permute.xlu0 %231  ;;  %692 = vmatprep.subr.bf16.mxu0 %v691_v30 }
  0xbf   : > { %v260_v33 = vsel %vm257_vm2, %v254_v16, %v256_v31  ;;  %v236_v34 = vsel %vm233_vm1, %v230_v11, %v232_v32  ;;  %v388_v38 = vld [vmem:[#allocation2] sm:$0xff] }
  0xc0   : > { %266 = vst [vmem:[#allocation2 + $0x28] sm:$0xf0] %v260_v33  ;;  %242 = vst [vmem:[#allocation2 + $0x28] sm:$0xf] %v236_v34 }
  0xc2   : > { %v278_v35 = vpop.permute.xlu1 %277  ;;  %v276_v36 = vpop.permute.xlu0 %275 }
  0xc3   : > { %v283_v37 = vsel %vm281_vm4, %v276_v36, %v278_v35  ;;  %v391_v39 = vld [vmem:[#allocation2 + $0x18] sm:$0xff]  ;;  %v390_v44 = vld [vmem:[#allocation2 + $0x10] sm:$0xff] }
  0xc4   : > { %289 = vst [vmem:[#allocation2 + $0x38] sm:$0xf] %v283_v37  ;;  %v693_v40 = vpack.c.bf16 %v391_v39, %v388_v38 }
  0xc6   : > { %v302_v41 = vpop.permute.xlu1 %301  ;;  %v300_v42 = vpop.permute.xlu0 %299  ;;  %694 = vmatpush1.bf16.msra.mxu0 %v693_v40 }
  0xc7   : > { %v307_v43 = vsel %vm305_vm5, %v300_v42, %v302_v41  ;;  %v393_v45 = vld [vmem:[#allocation2 + $0x28] sm:$0xff] }
  0xc8   : > { %313 = vst [vmem:[#allocation2 + $0x38] sm:$0xf0] %v307_v43  ;;  %v700_v46 = vpack.c.bf16 %v393_v45, %v390_v44 }
  0xca   : > { %v326_v47 = vpop.permute.xlu1 %325  ;;  %v324_v48 = vpop.permute.xlu0 %323  ;;  %701 = vmatpush3.bf16.msra.mxu1 %v700_v46 }
  0xcb   : > { %v331_v49 = vsel %vm329_vm6, %v324_v48, %v326_v47  ;;  %702 = vmatprep.subr.bf16.mxu1 %v872_v7 }
  0xcc   : > { %337 = vst [vmem:[#allocation2 + $0x50] sm:$0xf] %v331_v49 }
  0xce   : > { %v350_v50 = vpop.permute.xlu1 %349  ;;  %v348_v51 = vpop.permute.xlu0 %347 }
  0xcf   : > { %v355_v52 = vsel %vm353_vm7, %v348_v51, %v350_v50  ;;  %v395_v61 = vld [vmem:[#allocation2 + $0x38] sm:$0xff] }
  0xd0   : > { %361 = vst [vmem:[#allocation2 + $0x50] sm:$0xf0] %v355_v52 }
  0xd2   : > { %v298_v53 = vpop.permute.xlu1 %297  ;;  %v274_v54 = vpop.permute.xlu0 %273 }
  0xd3   : > { %v306_v55 = vsel %vm305_vm5, %v298_v53, %v300_v42  ;;  %v282_v56 = vsel %vm281_vm4, %v274_v54, %v276_v36 }
  0xd4   : > { %312 = vst [vmem:[#allocation2 + $0x30] sm:$0xf0] %v306_v55  ;;  %288 = vst [vmem:[#allocation2 + $0x30] sm:$0xf] %v282_v56 }
  0xd6   : > { %v346_v57 = vpop.permute.xlu1 %345  ;;  %v322_v58 = vpop.permute.xlu0 %321 }
  0xd7   : > { %v354_v59 = vsel %vm353_vm7, %v346_v57, %v348_v51  ;;  %v330_v60 = vsel %vm329_vm6, %v322_v58, %v324_v48  ;;  %v398_v62 = vld [vmem:[#allocation2 + $0x50] sm:$0xff] }
  0xd8   : > { %360 = vst [vmem:[#allocation2 + $0x48] sm:$0xf0] %v354_v59  ;;  %336 = vst [vmem:[#allocation2 + $0x48] sm:$0xf] %v330_v60  ;;  %v695_v63 = vpack.c.bf16 %v398_v62, %v395_v61 }
  0xda   : > { %v304_v0 = vpop.permute.xlu1 %303  ;;  %v280_v1 = vpop.permute.xlu0 %279  ;;  %696 = vmatprep.subr.bf16.mxu0 %v695_v63 }
  0xdb   : > { %v308_v2 = vsel %vm305_vm5, %v302_v41, %v304_v0  ;;  %v284_v3 = vsel %vm281_vm4, %v278_v35, %v280_v1  ;;  %v394_v9 = vld [vmem:[#allocation2 + $0x30] sm:$0xff] }
  0xdc   : > { %314 = vst [vmem:[#allocation2 + $0x40] sm:$0xf0] %v308_v2  ;;  %290 = vst [vmem:[#allocation2 + $0x40] sm:$0xf] %v284_v3 }
  0xde   : > { %v352_v4 = vpop.permute.xlu1 %351  ;;  %v328_v5 = vpop.permute.xlu0 %327 }
  0xdf   : > { %v356_v6 = vsel %vm353_vm7, %v350_v50, %v352_v4  ;;  %v332_v7 = vsel %vm329_vm6, %v326_v47, %v328_v5  ;;  %v397_v10 = vld [vmem:[#allocation2 + $0x48] sm:$0xff] }
  0xe0   : > { %362 = vst [vmem:[#allocation2 + $0x58] sm:$0xf0] %v356_v6  ;;  %338 = vst [vmem:[#allocation2 + $0x58] sm:$0xf] %v332_v7  ;;  %v697_v11 = vpack.c.bf16 %v397_v10, %v394_v9 }
  0xe2   : > { %v374_v12 = vpop.permute.xlu1 %373  ;;  %v372_v13 = vpop.permute.xlu0 %371  ;;  %698 = vmatpush1.bf16.msra.mxu0 %v697_v11 }
  0xe3   : > { %v379_v14 = vsel %vm377_vm8, %v372_v13, %v374_v12  ;;  %v396_v19 = vld [vmem:[#allocation2 + $0x40] sm:$0xff] }
  0xe4   : > { %385 = vst [vmem:[#allocation2 + $0x68] sm:$0xf] %v379_v14 }
  0xe6   : > { %v376_v15 = vpop.permute.xlu1 %375  ;;  %v370_v16 = vpop.permute.xlu0 %369 }
  0xe7   : > { %v380_v17 = vsel %vm377_vm8, %v374_v12, %v376_v15  ;;  %v378_v18 = vsel %vm377_vm8, %v370_v16, %v372_v13  ;;  %v399_v20 = vld [vmem:[#allocation2 + $0x58] sm:$0xff] }
  0xe8   : > { %386 = vst [vmem:[#allocation2 + $0x70] sm:$0xf] %v380_v17  ;;  %384 = vst [vmem:[#allocation2 + $0x60] sm:$0xf] %v378_v18  ;;  %v703_v21 = vpack.c.bf16 %v399_v20, %v396_v19 }
  0xea   : > { %704 = vmatpush3.bf16.msra.mxu1 %v703_v21 }
  0xeb   : > { %v401_v22 = vld [vmem:[#allocation2 + $0x68] sm:$0xf]  ;;  %686 = vmatprep.subr.mxu1 %v877_v8 }
  0xec   : > { %663 = vmatprep.subr.msk.mxu0 %vm413_vm9, %v401_v22 }
  0xef   : > { %v400_v24 = vld [vmem:[#allocation2 + $0x60] sm:$0xf]  ;;  %v402_v25 = vld [vmem:[#allocation2 + $0x70] sm:$0xf] }
  0xf0   : > { %664 = vmatpush1.msk.msra.mxu0 %vm413_vm9, %v400_v24  ;;  %687 = vmatpush3.msk.msra.mxu1 %vm413_vm9, %v402_v25 }
  0xf1   : > { %665 = vmatmul.mubr.msk.f32.vlgmr.msra.gmra.mrb[0].mxu0 %vm409_vm10, %v387_v23  ;;  %689 = vmatmul.mubr.msk.f32.vlgmr.msra.gmra.mrb[0].mxu1 %vm409_vm10, %v387_v23 }
  0xf7   : > { %v407_v26 = vpop.permute.xlu0 %406 }
 0x1c4   : > { %v489_v27 = vpop.f32.mrb[0].mxu0  ;;  %v560_v28 = vpop.f32.mrb[0].mxu1 }
 0x1c5   : > { %v490_v29 = vadd.f32 %v489_v27, %v407_v26  ;;  %v561_v8 = vadd.f32 %v560_v28, %v407_v26  ;;  %v491_v30 = vpop.f32.mrb[1].mxu0  ;;  %v690_v31 = vpop.f32.mrb[1].mxu1 }
 0x1c6   : > { %v492_v32 = vadd.f32 %v491_v30, %v407_v26 }
 0x1c7   : > { %v564_v33 = vmax.f32 %v490_v29, 0.0  ;;  %v566_v34 = vmax.f32 %v561_v8, 0.0 }
 0x1c8   : > { %v565_v35 = vmax.f32 %v492_v32, 0.0 }
 0x1c9   : > { %567 = vst [vmem:[%s186_s30] sm:$0xff] %v564_v33  ;;  %569 = vst [vmem:[%s186_s30 + $0x10] sm:$0xff] %v566_v34 }
 0x1ca   : > { %568 = vst [vmem:[%s186_s30 + $0x8] sm:$0xff] %v565_v35 }
 0x1cb   : > { %813 = shalt.err (!%p810_p4)
}
 0x1cc   : > { %s814_s29 = scalar_lea.hbm %s1049_s6, 384  ;;  %s818_s19 = scalar_lea.hbm %s1096_s3, 768 }
 0x1cd   : > { %p815_p5 = scmp.ne.s32.totalorder %s1049_s6, %s814_s29  ;;  %p819_p0 = scmp.lt.u32.totalorder %s1049_s6, %s1096_s3 }
 0x1ce   : > { %p820_p1 = scmp.lt.u32.totalorder %s818_s19, %s814_s29  ;;  %p822_p6 = scmp.lt.u32.totalorder %s814_s29, %s1049_s6 }
 0x1cf   : > { %p816_p8 = pnand %p815_p5, %p1105_p11 }
 0x1d0   : > { %p821_p3 = por %p820_p1, %p819_p0 }
 0x1d1   : > { %p817_p9 = pneg %p816_p8 }
 0x1d2   : > { %p823_p12 = por %p822_p6, %p821_p3 }
 0x1d4   : > { %p824_p13 = pnand %p823_p12, %p817_p9 }
 0x1d6   : > { %827 = shalt.err (!%p824_p13)
}
 0x1d7   : > { %709 = dma.vmem_to_hbm [thread:$0]  (%p1105_p11), %s1051_s5, 384, %s1049_s6, %s571_s16  }
 0x1d8 PF: > { %s597_s26 = sand.u32 1, %s854_s12   ;;  %p1106_p7 = scmp.ne.s32.totalorder %s1101_s25, 0 }
 0x1d9   : > { %p1107_p10 = scmp.ge.s32.totalorder %s866_s15, 2  ;;  %s598_s27 = scalar_lea.sflag [#allocation5], %s597_s26 }
 0x1db   : > { %p716_p2 = pnand %p1107_p10, %p1106_p7 }
 0x1dd   : > { %849 = dma.done.wait (!%p716_p2), %s598_s27, 384  }
 0x1de   : > { %851 = vsyncadd (!%p716_p2), %s598_s27, 4294966912  ;;  %p16_p4 = scmp.ge.s32.totalorder %s927_s18, 4   ;;  %s1108_s12 = smov %s858_s13 }
 0x1df   : > { %s1109_s13 = smov %s862_s14  ;;  %s1110_s14 = smov %s939_s21 }
 0x1e0   : > { %s1111_s15 = smov %s927_s18  ;;  %18 = sbr.rel (!%p16_p4) target bundleno = 5 (0x5), region = 77 }
 0x1e7   :  { %603 = vsyncpa [#allocation4], 1 }
 0x1e8   :  { %605 = vsyncpa [#allocation4 + $0x1], 1 }
 0x1e9   :  { %606 = vsyncpa [#allocation5], 1 }
 0x1ea   :  { %608 = vsyncpa [#allocation5 + $0x1], 1 }

</bundles_post_ra>
